<compile_context>
chip_gen: v5e
topology: v5e:2x2
jax: 0.10.0
libtpu: 0.0.40
codegen_flags: <defaults>
</compile_context>

<pallas_src>
import functools

import jax
import jax.numpy as jnp
import numpy as np
from jax.experimental import pallas as pl
from jax.experimental.pallas import tpu as pltpu


def _round_up(x: int, m: int) -> int:
    return (x + m - 1) // m * m


def _padded_bytes(rows: int, cols: int, itemsize: int) -> int:
    # VMEM footprint of a 2-D block after (8, 128) sublane/lane padding.
    return _round_up(max(rows, 1), 8) * _round_up(max(cols, 1), 128) * itemsize


def attention_fusion_kernel(n_mod, out_dim, approx_recip,
                            x_ref, w_all_ref, b_att_ref, b_fc_ref, out_ref):
    # x_ref:     [TB, total_dim]  packed (lane-dense) modality features
    # w_all_ref: [total_dim, n_mod*out_dim + n_mod]  block-diagonal fusion + attention weights
    # b_att_ref: [1, n_mod], b_fc_ref: [1, out_dim]
    xm = x_ref[...].astype(w_all_ref.dtype)          # MXU operand dtype (bf16 if requested)

    # Single full-K matmul producing both the per-modality fusion partials and the
    # attention logits.  It has no dependency on the softmax (EUP/VPU) chain below,
    # so the MXU push overlaps the transcendental work.
    y = jnp.dot(xm, w_all_ref[...], preferred_element_type=jnp.float32)   # [TB, M*out_dim + M]

    # Softmax over the (tiny, static) modality axis, f32 VPU/EUP math.
    logits = y[:, n_mod * out_dim:] + b_att_ref[...].astype(jnp.float32)  # [TB, M]
    m = jnp.max(logits, axis=-1, keepdims=True)
    e = jnp.exp(logits - m)
    inv = pl.reciprocal(jnp.sum(e, axis=-1, keepdims=True), approx=approx_recip)  # EUP slot
    attn = e * inv                                                         # [TB, M]

    # fused = sum_i attn_i * (x_i @ W_fc_i) + b_fc  — identical to the Linear applied to the
    # attention-gated concatenation (diagonal row scaling commutes with the right-matmul).
    acc = attn[:, 0:1] * y[:, 0:out_dim]
    for i in range(1, n_mod):
        acc = acc + attn[:, i:i + 1] * y[:, i * out_dim:(i + 1) * out_dim]
    fused = acc + b_fc_ref[...].astype(jnp.float32)

    # Dropout(0.1) == identity in eval mode.
    out_ref[...] = jnp.maximum(fused, 0.0).astype(out_ref.dtype)


def attention_fusion(modality_features, att_weights, att_biases, fc_weight, fc_bias,
                     *, tile_rows=4096, matmul_dtype=None, input_buffer_count=2,
                     out_dtype=jnp.float32, approx_recip=True,
                     vmem_budget_bytes=24 << 20):
    """modality_features: list of [B, dim_i] arrays.
       att_weights[i]: [dim_i] vector, att_biases[i]: scalar.
       fc_weight: [total_dim, out_dim], fc_bias: [out_dim]."""
    dims = [int(f.shape[1]) for f in modality_features]
    n_mod = len(dims)
    total_dim = sum(dims)
    B = int(modality_features[0].shape[0])
    out_dim = int(fc_weight.shape[1])

    # Lane-dense packed features: one [B, total_dim] array (done once; producers that already
    # emit the packed layout avoid even this single pass).
    x = modality_features[0] if n_mod == 1 else jnp.concatenate(modality_features, axis=1)

    w_dtype = jnp.dtype(matmul_dtype if matmul_dtype is not None
                        else jnp.result_type(fc_weight))

    # Block-diagonal parameter packing (static Python slices, jit-friendly):
    #   columns [i*out_dim:(i+1)*out_dim]  <- fusion-Linear rows for modality i
    #   column  [n_mod*out_dim + i]        <- attention-Linear (out_features=1) for modality i
    offs = [0]
    for d in dims:
        offs.append(offs[-1] + d)
    w_all = jnp.zeros((total_dim, n_mod * out_dim + n_mod), w_dtype)
    fc_w = jnp.asarray(fc_weight, w_dtype)
    for i, d in enumerate(dims):
        lo, hi = offs[i], offs[i + 1]
        w_all = w_all.at[lo:hi, i * out_dim:(i + 1) * out_dim].set(fc_w[lo:hi, :])
        w_all = w_all.at[lo:hi, n_mod * out_dim + i].set(
            jnp.asarray(att_weights[i], w_dtype).reshape(d))
    b_att = jnp.stack([jnp.asarray(b, jnp.float32).reshape(()) for b in att_biases]
                      ).reshape(1, n_mod)
    b_fc = jnp.asarray(fc_bias, jnp.float32).reshape(1, out_dim)

    feat_itemsize = int(jnp.dtype(x.dtype).itemsize)
    out_itemsize = int(jnp.dtype(out_dtype).itemsize)
    n_in_buf = max(int(input_buffer_count), 2)

    def block_bytes(tb):
        # Lane-padded, multi-buffered per-step working set (input + output blocks).
        return (n_in_buf * tb * _round_up(total_dim, 128) * feat_itemsize
                + 2 * tb * _round_up(out_dim, 128) * out_itemsize)

    # Batch tile: multiple of 8 sublanes, large enough to amortize the per-grid-step
    # overhead, small enough to (a) keep >= 2 grid steps so v7x's two TensorCores both get
    # work on the "parallel" axis, and (b) fit the VMEM budget (v5e 16 MiB scoped default,
    # v7x 64 MiB physical).
    TB = _round_up(min(int(tile_rows), B), 8)
    if pl.cdiv(B, TB) < 2 and B > 8:
        TB = _round_up(pl.cdiv(B, 2), 8)
    while TB > 8 and block_bytes(TB) > int(vmem_budget_bytes):
        TB = _round_up(TB // 2, 8)
    nb = pl.cdiv(B, TB)          # ragged last block allowed: math is per-row only

    w_bytes = 2 * (_padded_bytes(total_dim, n_mod * out_dim + n_mod, int(w_dtype.itemsize))
                   + _padded_bytes(1, n_mod, 4) + _padded_bytes(1, out_dim, 4))
    vmem_limit = int(min(max(block_bytes(TB) + w_bytes + (4 << 20), 16 << 20), 48 << 20))

    if n_in_buf != 2:
        # v7x knob: with small per-step tiles a third buffer hides DMA issue latency.
        x_spec = pl.BlockSpec((TB, total_dim), lambda i: (i, 0),
                              pipeline_mode=pl.Buffered(n_in_buf))
    else:
        x_spec = pl.BlockSpec((TB, total_dim), lambda i: (i, 0))
    const_spec = lambda shape: pl.BlockSpec(shape, lambda i: (0, 0))

    cost = pl.CostEstimate(
        flops=2 * B * total_dim * (n_mod * out_dim + n_mod)
              + 8 * B * (n_mod + n_mod * out_dim),
        transcendentals=B * n_mod,
        bytes_accessed=(B * total_dim * feat_itemsize + B * out_dim * out_itemsize
                        + total_dim * (n_mod * out_dim + n_mod) * int(w_dtype.itemsize)
                        + (n_mod + out_dim) * 4),
    )

    return pl.pallas_call(
        functools.partial(attention_fusion_kernel, n_mod, out_dim, bool(approx_recip)),
        out_shape=jax.ShapeDtypeStruct((B, out_dim), out_dtype),
        grid=(nb,),
        in_specs=[x_spec,
                  const_spec((total_dim, n_mod * out_dim + n_mod)),
                  const_spec((1, n_mod)),
                  const_spec((1, out_dim))],
        out_specs=pl.BlockSpec((TB, out_dim), lambda i: (i, 0)),
        compiler_params=pltpu.CompilerParams(
            dimension_semantics=("parallel",),
            vmem_limit_bytes=vmem_limit),
        cost_estimate=cost,
    )(x, w_all, b_att, b_fc)


def reference(modality_features, att_weights, att_biases, fc_weight, fc_bias):
    scores = [f @ w.reshape(-1, 1) + b for f, w, b in
              zip(modality_features, att_weights, att_biases)]
    attn = jax.nn.softmax(jnp.concatenate(scores, axis=1), axis=1)
    weighted = [attn[:, i:i + 1] * f for i, f in enumerate(modality_features)]
    cat = jnp.concatenate(weighted, axis=1)
    return jax.nn.relu(cat @ fc_weight + fc_bias)


if __name__ == "__main__":
    key = jax.random.PRNGKey(0)
    B = 20                          # not tile-aligned -> exercises the ragged last block
    modality_dims = [32, 64, 32]    # sums to 128 -> packed features are exactly lane-dense
    output_dim = 32
    total_dim = sum(modality_dims)
    n_mod = len(modality_dims)

    keys = jax.random.split(key, n_mod + 2 * n_mod + 2)
    feats = [jax.random.normal(keys[i], (B, d), dtype=jnp.float32)
             for i, d in enumerate(modality_dims)]

    # Deterministic parameter init (PyTorch Linear-style uniform +-1/sqrt(fan_in)).
    att_weights, att_biases = [], []
    for i, d in enumerate(modality_dims):
        bound = 1.0 / np.sqrt(d)
        att_weights.append(jax.random.uniform(keys[n_mod + 2 * i], (d,),
                                              minval=-bound, maxval=bound))
        att_biases.append(float(jax.random.uniform(keys[n_mod + 2 * i + 1], (),
                                                   minval=-bound, maxval=bound)))
    bound = 1.0 / np.sqrt(total_dim)
    fc_weight = jax.random.uniform(keys[-2], (total_dim, output_dim),
                                   minval=-bound, maxval=bound)
    fc_bias = jax.random.uniform(keys[-1], (output_dim,),
                                 minval=-bound, maxval=bound)

    ref = reference(feats, att_weights, att_biases, fc_weight, fc_bias)

    # (1) Production defaults: tile_rows=4096 collapses here to TB=16 (B=20), exercising the
    #     v7x keep->=2-grid-steps cap and the un-padded ragged last block.
    out = jax.block_until_ready(
        attention_fusion(feats, att_weights, att_biases, fc_weight, fc_bias))
    # Tolerance relaxed from 1e-5 only because of the approx (EUP) reciprocal in the softmax.
    np.testing.assert_allclose(np.asarray(out), np.asarray(ref), rtol=2e-3, atol=2e-3)

    # (2) Tiny tile to force a multi-step, software-pipelined batch grid (TB=8 -> 3 steps,
    #     ragged final block), i.e. the production tiled path at toy size.
    out2 = jax.block_until_ready(
        attention_fusion(feats, att_weights, att_biases, fc_weight, fc_bias, tile_rows=8))
    np.testing.assert_allclose(np.asarray(out2), np.asarray(ref), rtol=2e-3, atol=2e-3)

    print("KERNEL_OK")
</pallas_src>

<mosaic_0001>
module attributes {stable_mosaic.version = 11 : i64} {
  func.func @attention_fusion_kernel(%arg0: i32, %arg1: memref<16x128xf32, #tpu.memory_space<vmem>>, %arg2: memref<128x99xf32, #tpu.memory_space<vmem>>, %arg3: memref<1x3xf32, #tpu.memory_space<vmem>>, %arg4: memref<1x32xf32, #tpu.memory_space<vmem>>, %arg5: memref<16x32xf32, #tpu.memory_space<vmem>>) attributes {dimension_semantics = [#tpu.dimension_semantics<parallel>], iteration_bounds = array<i64: 2>, scalar_prefetch = 0 : i64, scratch_operands = 0 : i64, tpu.core_type = #tpu.core_type<tc>, window_params = [{transform_indices = @transform_0, window_bounds = array<i64: 16, 128>}, {pipeline_mode = #tpu.pipeline_mode<synchronous>, transform_indices = @transform_1, window_bounds = array<i64: 128, 99>}, {pipeline_mode = #tpu.pipeline_mode<synchronous>, transform_indices = @transform_2, window_bounds = array<i64: 1, 3>}, {pipeline_mode = #tpu.pipeline_mode<synchronous>, transform_indices = @transform_3, window_bounds = array<i64: 1, 32>}, {transform_indices = @transform_4, window_bounds = array<i64: 16, 32>}]} {
    %c0 = arith.constant 0 : index
    %c0_0 = arith.constant 0 : index
    %0 = vector.load %arg1[%c0, %c0_0] : memref<16x128xf32, #tpu.memory_space<vmem>>, vector<16x128xf32>
    %c0_1 = arith.constant 0 : index
    %c0_2 = arith.constant 0 : index
    %1 = vector.load %arg2[%c0_1, %c0_2] : memref<128x99xf32, #tpu.memory_space<vmem>>, vector<128x99xf32>
    %cst = arith.constant dense<0.000000e+00> : vector<16x99xf32>
    %2 = tpu.matmul %0, %1, %cst {dimension_numbers = #tpu.dot_dimension_numbers<[1], [0], [0], [1], [0, 0, 1, 1], [], []>} : vector<16x128xf32>, vector<128x99xf32>, vector<16x99xf32> -> vector<16x99xf32>
    %3 = vector.extract_strided_slice %2 {offsets = [0, 96], sizes = [16, 3], strides = [1, 1]} : vector<16x99xf32> to vector<16x3xf32>
    %c0_3 = arith.constant 0 : index
    %c0_4 = arith.constant 0 : index
    %4 = vector.load %arg3[%c0_3, %c0_4] : memref<1x3xf32, #tpu.memory_space<vmem>>, vector<1x3xf32>
    %5 = vector.broadcast %4 : vector<1x3xf32> to vector<16x3xf32>
    %6 = arith.addf %3, %5 : vector<16x3xf32>
    %cst_5 = arith.constant dense<0xFF800000> : vector<16xf32>
    %7 = vector.multi_reduction <maximumf>, %6, %cst_5 [1] : vector<16x3xf32> to vector<16xf32>
    %8 = vector.shape_cast %7 : vector<16xf32> to vector<16x1xf32>
    %9 = vector.broadcast %8 : vector<16x1xf32> to vector<16x3xf32>
    %10 = arith.subf %6, %9 : vector<16x3xf32>
    %11 = math.exp %10 : vector<16x3xf32>
    %cst_6 = arith.constant dense<0.000000e+00> : vector<16xf32>
    %12 = vector.multi_reduction <add>, %11, %cst_6 [1] : vector<16x3xf32> to vector<16xf32>
    %13 = vector.shape_cast %12 : vector<16xf32> to vector<16x1xf32>
    %14 = tpu.reciprocal %13 {approx = true} : vector<16x1xf32> -> vector<16x1xf32>
    %15 = vector.broadcast %14 : vector<16x1xf32> to vector<16x3xf32>
    %16 = arith.mulf %11, %15 : vector<16x3xf32>
    %17 = vector.extract_strided_slice %16 {offsets = [0, 0], sizes = [16, 1], strides = [1, 1]} : vector<16x3xf32> to vector<16x1xf32>
    %18 = vector.extract_strided_slice %2 {offsets = [0, 0], sizes = [16, 32], strides = [1, 1]} : vector<16x99xf32> to vector<16x32xf32>
    %19 = vector.broadcast %17 : vector<16x1xf32> to vector<16x32xf32>
    %20 = arith.mulf %19, %18 : vector<16x32xf32>
    %21 = vector.extract_strided_slice %16 {offsets = [0, 1], sizes = [16, 1], strides = [1, 1]} : vector<16x3xf32> to vector<16x1xf32>
    %22 = vector.extract_strided_slice %2 {offsets = [0, 32], sizes = [16, 32], strides = [1, 1]} : vector<16x99xf32> to vector<16x32xf32>
    %23 = vector.broadcast %21 : vector<16x1xf32> to vector<16x32xf32>
    %24 = arith.mulf %23, %22 : vector<16x32xf32>
    %25 = arith.addf %20, %24 : vector<16x32xf32>
    %26 = vector.extract_strided_slice %16 {offsets = [0, 2], sizes = [16, 1], strides = [1, 1]} : vector<16x3xf32> to vector<16x1xf32>
    %27 = vector.extract_strided_slice %2 {offsets = [0, 64], sizes = [16, 32], strides = [1, 1]} : vector<16x99xf32> to vector<16x32xf32>
    %28 = vector.broadcast %26 : vector<16x1xf32> to vector<16x32xf32>
    %29 = arith.mulf %28, %27 : vector<16x32xf32>
    %30 = arith.addf %25, %29 : vector<16x32xf32>
    %c0_7 = arith.constant 0 : index
    %c0_8 = arith.constant 0 : index
    %31 = vector.load %arg4[%c0_7, %c0_8] : memref<1x32xf32, #tpu.memory_space<vmem>>, vector<1x32xf32>
    %32 = vector.broadcast %31 : vector<1x32xf32> to vector<16x32xf32>
    %33 = arith.addf %30, %32 : vector<16x32xf32>
    %cst_9 = arith.constant 0.000000e+00 : f32
    %34 = vector.broadcast %cst_9 : f32 to vector<16x32xf32>
    %35 = arith.maximumf %33, %34 : vector<16x32xf32>
    %c0_10 = arith.constant 0 : index
    %c0_11 = arith.constant 0 : index
    %36 = vector.load %arg5[%c0_10, %c0_11] : memref<16x32xf32, #tpu.memory_space<vmem>>, vector<16x32xf32>
    tpu.vector_store %arg5[%c0_10, %c0_11], %35 {strides = array<i32>} : memref<16x32xf32, #tpu.memory_space<vmem>>, vector<16x32xf32>,
    return
  }
  func.func @transform_0(%arg0: i32) -> (i32, i32) {
    %c0_i32 = arith.constant 0 : i32
    %c0_i32_0 = arith.constant 0 : i32
    return %arg0, %c0_i32 : i32, i32
  }
  func.func @transform_1(%arg0: i32) -> (i32, i32) {
    %c0_i32 = arith.constant 0 : i32
    %c0_i32_0 = arith.constant 0 : i32
    %c0_i32_1 = arith.constant 0 : i32
    return %c0_i32, %c0_i32_0 : i32, i32
  }
  func.func @transform_2(%arg0: i32) -> (i32, i32) {
    %c0_i32 = arith.constant 0 : i32
    %c0_i32_0 = arith.constant 0 : i32
    %c0_i32_1 = arith.constant 0 : i32
    return %c0_i32, %c0_i32_0 : i32, i32
  }
  func.func @transform_3(%arg0: i32) -> (i32, i32) {
    %c0_i32 = arith.constant 0 : i32
    %c0_i32_0 = arith.constant 0 : i32
    %c0_i32_1 = arith.constant 0 : i32
    return %c0_i32, %c0_i32_0 : i32, i32
  }
  func.func @transform_4(%arg0: i32) -> (i32, i32) {
    %c0_i32 = arith.constant 0 : i32
    %c0_i32_0 = arith.constant 0 : i32
    return %arg0, %c0_i32 : i32, i32
  }
}

</mosaic_0001>

<bundles_post_ra>
// kernel: tpu_custom_call.1
= control target key start
LH: loop header
LB: loop body
LE: loop exit
PB: predicated region body
PF: predicated region fallthrough
CT: control target
= control target key end

     0   :  { %9 = vsyncpa [#allocation3], 0  ;;  %s846_s0 = inlined_call_operand.vmem [shape: f32[20,128], index: 0, kind: input, shape index: {}]   ;;  %s847_s1 = inlined_call_operand.vmem [shape: f32[128,99], index: 1, kind: input, shape index: {}]   ;;  %s848_s2 = inlined_call_operand.vmem [shape: f32[1,3], index: 2, kind: input, shape index: {}]   ;;  %s849_s3 = inlined_call_operand.vmem [shape: f32[1,32], index: 3, kind: input, shape index: {}]   ;;  %s850_s4 = inlined_call_operand.hbm [shape: f32[20,32], index: 4, kind: output, shape index: {}]  }
   0x1   :  { %11 = vsyncpa [#allocation3 + $0x1], 0  ;;  %s656_s15 = smov 0   ;;  %s658_s16 = smov 0  }
   0x2   :  { %s660_s17 = smov 0   ;;  %s662_s18 = smov 0  }
   0x3 LB: > { %s677_s19 = sadd.s32 4294967295, %s620_s18   ;;  %s452_s20 = sadd.s32 4294967294, %s620_s18   ;;  %s620_s18 = sphi %s662_s18, %s857_s18   ;;  %s616_s17 = sphi %s660_s17, %s856_s17   ;;  %s612_s16 = sphi %s658_s16, %s855_s16   ;;  %s608_s15 = sphi %s656_s15, %s854_s15  }
   0x4   : > { %s681_s21 = sadd.s32 1, %s620_s18   ;;  %s113_s22 = sadd.s32 1, %s616_s17 }
   0x5   : > { %s110_s23 = ssub.s32 %s620_s18, %s681_s21  ;;  %p123_p0 = scmp.ne.s32.totalorder %s616_s17, %s612_s16 }
   0x6   : > { %p111_p1 = scmp.eq.s32.totalorder %s110_s23, 0  ;;  %p124_p2 = scmp.eq.s32.totalorder %s677_s19, 1 }
   0x7   : > { %p129_p3 = scmp.ne.s32.totalorder %s612_s16, %s608_s15  ;;  %p130_p4 = scmp.eq.s32.totalorder %s452_s20, 1 }
   0x8   : > { %s692_s24 = scalar_select %p111_p1, %s616_s17, %s113_s22  }
   0x9   : > { %p694_p5 = por %p124_p2, %p123_p0  ;;  %p698_p6 = por %p130_p4, %p129_p3 }
   0xa   : > { %p455_p7 = scmp.ge.s32.totalorder %s620_s18, 1  ;;  %p174_p8 = scmp.lt.s32.totalorder %s620_s18, 3 }
   0xc   : > { %p175_p9 = pnand %p455_p7, %p174_p8 }
   0xd   : > { %s622_s20 = smov (!%p175_p9), 96   ;;  %s733_s29 = sshll.u32 (!%p175_p9), %s677_s19, 1 }
   0xe   : > { %178 = sbr.rel (%p175_p9) target bundleno = 804 (0x324), region = 36  ;;  %p209_p10 = scmp.lt.s32.totalorder (!%p175_p9), %s733_s29, 2 }
   0xf   : > { %s201_s11 = sand.u32 (!%p175_p9), 1, %s612_s16   ;;  %s627_s12 = smov (!%p175_p9), 64  }
  0x10   : > { %s786_s23 = scalar_lea.sflag (!%p175_p9), [#allocation3], %s201_s11 }
  0x13   : > { %v240_v0 = vld [vmem:[%s847_s1 + $0x78] sm:$0xff]  ;;  %v239_v1 = vld [vmem:[%s847_s1 + $0x70] sm:$0xff]  ;;  %v238_v2 = vld [vmem:[%s847_s1 + $0x68] sm:$0xff]  ;;  %s210_s10 = scalar_select %p209_p10, %s733_s29, 2  ;;  %vm272_vm0 = vcmask 810752   ;;  %vm293_vm1 = vcmask 23552  }
  0x14   : > { %241 = vmatpush.msra.mxu0 %v240_v0  ;;  %469 = vmatpush.msra.mxu1 %v240_v0  ;;  %v237_v3 = vld [vmem:[%s847_s1 + $0x60] sm:$0xff]  ;;  %v236_v5 = vld [vmem:[%s847_s1 + $0x58] sm:$0xff]  ;;  %v235_v6 = vld [vmem:[%s847_s1 + $0x50] sm:$0xff]  ;;  %v624_v38 = vmov 98   ;;  %v625_v39 = vmov 97   ;;  %v626_v46 = vmov 96  }
  0x15   : > { %v537_v4 = vld [vmem:[%s848_s2] ss:$0 sm:$0xff]  ;;  %v234_v7 = vld [vmem:[%s847_s1 + $0x48] sm:$0xff]  ;;  %v232_v9 = vld [vmem:[%s847_s1 + $0x38] sm:$0xff]  ;;  %s458_s22 = sshll.u32 %s210_s10, 3  ;;  %s623_s10 = smov 32   ;;  %534 = vset.pattern.permute.xlu1 %v624_v38  ;;  %532 = vset.pattern.permute.xlu0 %v625_v39 }
  0x16   : > { %242 = vmatpush.msra.mxu0 %v239_v1  ;;  %470 = vmatpush.msra.mxu1 %v239_v1  ;;  %v233_v8 = vld [vmem:[%s847_s1 + $0x40] sm:$0xff]  ;;  %v231_v10 = vld [vmem:[%s847_s1 + $0x30] sm:$0xff]  ;;  %v230_v11 = vld [vmem:[%s847_s1 + $0x28] sm:$0xff]  ;;  %s212_s7 = scalar_lea.vmem %s846_s0, %s458_s22  ;;  %s456_s22 = sshll.u32 %s201_s11, 4  ;;  %vm364_vm2 = vcmask 261120  }
  0x17   : > { %267 = vrot.lane.b32.xlu0 %v537_v4, %s622_s20  ;;  %v229_v12 = vld [vmem:[%s847_s1 + $0x20] sm:$0xff]  ;;  %v228_v13 = vld [vmem:[%s847_s1 + $0x18] sm:$0xff]  ;;  %v227_v14 = vld [vmem:[%s847_s1 + $0x10] sm:$0xff]  ;;  %531 = vset.pattern.permute.xlu2 %v625_v39  ;;  %s376_s27 = ssub.s32 (%p694_p5), 3, %s733_s29 }
  0x18   : > { %243 = vmatpush.msra.mxu0 %v238_v2  ;;  %471 = vmatpush.msra.mxu1 %v238_v2  ;;  %v226_v15 = vld [vmem:[%s847_s1 + $0x8] sm:$0xff]  ;;  %v225_v16 = vld [vmem:[%s847_s1] sm:$0xff]  ;;  %p377_p11 = scmp.lt.s32.totalorder (%p694_p5), %s376_s27, 2 }
  0x19   : > { %v223_v17 = vld [vmem:[%s212_s7] sm:$0xff]  ;;  %v224_v18 = vld [vmem:[%s212_s7 + $0x8] sm:$0xff] }
  0x1a   : > { %244 = vmatpush.msra.mxu0 %v237_v3  ;;  %472 = vmatpush.msra.mxu1 %v237_v3  ;;  %v538_v60 = vld [vmem:[%s849_s3] ss:$0 sm:$0xff] }
  0x1c   : > { %245 = vmatpush.msra.mxu0 %v236_v5  ;;  %473 = vmatpush.msra.mxu1 %v236_v5 }
  0x1e   : > { %246 = vmatpush.msra.mxu0 %v235_v6  ;;  %474 = vmatpush.msra.mxu1 %v235_v6 }
  0x20   : > { %247 = vmatpush.msra.mxu0 %v234_v7  ;;  %475 = vmatpush.msra.mxu1 %v234_v7 }
  0x22   : > { %248 = vmatpush.msra.mxu0 %v233_v8  ;;  %476 = vmatpush.msra.mxu1 %v233_v8 }
  0x24   : > { %249 = vmatpush.msra.mxu0 %v232_v9  ;;  %477 = vmatpush.msra.mxu1 %v232_v9 }
  0x26   : > { %250 = vmatpush.msra.mxu0 %v231_v10  ;;  %478 = vmatpush.msra.mxu1 %v231_v10 }
  0x28   : > { %251 = vmatpush.msra.mxu0 %v230_v11  ;;  %479 = vmatpush.msra.mxu1 %v230_v11 }
  0x2a   : > { %252 = vmatpush.msra.mxu0 %v229_v12  ;;  %480 = vmatpush.msra.mxu1 %v229_v12 }
  0x2c   : > { %253 = vmatpush.msra.mxu0 %v228_v13  ;;  %481 = vmatpush.msra.mxu1 %v228_v13 }
  0x2e   : > { %254 = vmatpush.msra.mxu0 %v227_v14  ;;  %482 = vmatpush.msra.mxu1 %v227_v14 }
  0x30   : > { %255 = vmatpush.msra.mxu0 %v226_v15  ;;  %483 = vmatpush.msra.mxu1 %v226_v15 }
  0x32   : > { %256 = vmatpush.msra.mxu0 %v225_v16  ;;  %484 = vmatpush.msra.mxu1 %v225_v16 }
  0x33   : > { %257 = vmatmul.f32.vlgmr.msra.gmra.mxu0 %v223_v17  ;;  %260 = vmatmul.f32.vlgmr.msra.gmra.mxu1 %v224_v18 }
  0x89   : > { %v268_v19 = vpop.permute.xlu0 %267 }
  0xb0   : > { %v764_v20 = vpop.f32.mrf.mxu0  ;;  %v766_v21 = vpop.f32.mrf.mxu1 }
  0xb1   : > { %v271_v22 = vadd.f32 %v268_v19, %v766_v21  ;;  %v270_v23 = vadd.f32 %v268_v19, %v764_v20 }
  0xb3   : > { %v276_v24 = vsel %vm272_vm0, %v271_v22, -inf  ;;  %v273_v25 = vsel %vm272_vm0, %v270_v23, -inf }
  0xb4   : > { %277 = vmax.xlane.f32.xlu1 %v276_v24  ;;  %274 = vmax.xlane.f32.xlu0 %v273_v25 }
 0x127   : > { %v278_v26 = vpop.xlane.xlu1 %277  ;;  %v275_v27 = vpop.xlane.xlu0 %274 }
 0x128   : > { %v280_v28 = vsub.f32 %v271_v22, %v278_v26  ;;  %v279_v29 = vsub.f32 %v270_v23, %v275_v27 }
 0x12a   : > { %v283_v30 = vmul.f32 1.442695, %v280_v28  ;;  %v281_v31 = vmul.f32 1.442695, %v279_v29 }
 0x12c   : > { %539 = vpow2.f32 %v283_v30 }
 0x12d   : > { %541 = vpow2.f32 %v281_v31 }
 0x132   : > { %v540_v32 = vpop.eup %539 }
 0x133   : > { %v542_v33 = vpop.eup %541  ;;  %289 = vrot.lane.b32.xlu2 %v540_v32, %s623_s10 }
 0x134   : > { %287 = vrot.lane.b32.xlu1 %v542_v33, %s623_s10 }
 0x18d   : > { %v290_v34 = vpop.permute.xlu2 %289 }
 0x18e   : > { %v297_v35 = vsel %vm293_vm1, %v290_v34, 0.0 }
 0x18f   : > { %298 = vadd.xlane.f32.xlu1 %v297_v35 }
 0x1a6   : > { %v288_v36 = vpop.permute.xlu1 %287 }
 0x1a7   : > { %v294_v37 = vsel %vm293_vm1, %v288_v36, 0.0 }
 0x1a8   : > { %295 = vadd.xlane.f32.xlu2 %v294_v37 }
 0x202   : > { %v299_v40 = vpop.xlane.xlu1 %298 }
 0x203   : > { %543 = vrcp.f32 %v299_v40 }
 0x209   : > { %v544_v41 = vpop.eup %543 }
 0x20a   : > { %v303_v42 = vmul.f32 %v544_v41, %v540_v32 }
 0x20c   : > { %341 = vperm.xlu1 %534, %v303_v42   ;;  %321 = vperm.xlu0 %532, %v303_v42  }
 0x214   : > { %536 = vset.pattern.permute.xlu0 %v624_v38 }
 0x21b   : > { %v296_v43 = vpop.xlane.xlu2 %295 }
 0x21c   : > { %545 = vrcp.f32 %v296_v43 }
 0x222   : > { %v546_v44 = vpop.eup %545 }
 0x223   : > { %v302_v45 = vmul.f32 %v546_v44, %v542_v33 }
 0x225   : > { %317 = vperm.xlu2 %531, %v302_v45  }
 0x22d   : > { %533 = vset.pattern.permute.xlu2 %v624_v38 }
 0x22e   : > { %337 = vperm.xlu2 %533, %v302_v45  }
 0x236   : > { %535 = vset.pattern.permute.xlu2 %v626_v46 }
 0x237   : > { %306 = vperm.xlu2 %535, %v302_v45  }
 0x23f   : > { %311 = vperm.xlu2 %535, %v303_v42  }
 0x27e   : > { %v342_v47 = vpop.permute.xlu1 %341  ;;  %v322_v48 = vpop.permute.xlu0 %321 }
 0x27f   : > { %v318_v49 = vpop.permute.xlu2 %317  ;;  %v345_v50 = vmul.f32 %v342_v47, %v766_v21  ;;  %v325_v51 = vmul.f32 %v322_v48, %v766_v21 }
 0x280   : > { %v324_v52 = vmul.f32 %v318_v49, %v764_v20 }
 0x281   : > { %350 = vrot.lane.b32.xlu1 %v345_v50, %s627_s12  ;;  %330 = vrot.lane.b32.xlu2 %v325_v51, %s622_s20 }
 0x282   : > { %328 = vrot.lane.b32.xlu0 %v324_v52, %s622_s20  ;;  %s203_s20 = scalar_lea.vmem [#allocation2], %s456_s22 }
 0x288   : > { %v338_v53 = vpop.permute.xlu2 %337 }
 0x289   : > { %v344_v54 = vmul.f32 %v338_v53, %v764_v20 }
 0x28b   : > { %348 = vrot.lane.b32.xlu0 %v344_v54, %s627_s12 }
 0x291   : > { %v307_v55 = vpop.permute.xlu2 %306 }
 0x292   : > { %v314_v2 = vmul.f32 %v307_v55, %v764_v20 }
 0x299   : > { %v312_v56 = vpop.permute.xlu2 %311 }
 0x29a   : > { %v315_v58 = vmul.f32 %v312_v56, %v766_v21 }
 0x2db   : > { %v331_v57 = vpop.permute.xlu2 %330 }
 0x2dc   : > { %v335_v59 = vadd.f32 %v331_v57, %v315_v58 }
 0x2f3   : > { %v351_v61 = vpop.permute.xlu1 %350 }
 0x2f4   : > { %v355_v62 = vadd.f32 %v351_v61, %v335_v59  ;;  %v329_v63 = vpop.permute.xlu0 %328 }
 0x2f5   : > { %v334_v3 = vadd.f32 %v329_v63, %v314_v2 }
 0x2f6   : > { %v361_v0 = vadd.f32 %v538_v60, %v355_v62 }
 0x2f8   : > { %v363_v1 = vmax.f32 %v361_v0, 0.0 }
 0x2fa   : > { %366 = vst.msk [vmem:[%s203_s20 + $0x8] sm:$0xff] %vm364_vm2, %v363_v1 }
 0x2fd   : > { %v349_v4 = vpop.permute.xlu0 %348 }
 0x2fe   : > { %v354_v5 = vadd.f32 %v349_v4, %v334_v3 }
 0x300   : > { %v360_v6 = vadd.f32 %v538_v60, %v354_v5  ;;  %374 = sbr.rel (!%p694_p5) target bundleno = 804 (0x324), region = 40 }
 0x302   : > { %v362_v7 = vmax.f32 %v360_v6, 0.0 }
 0x304   : > { %365 = vst.msk [vmem:[%s203_s20] sm:$0xff] %vm364_vm2, %v362_v7 }
 0x305   : > { %s859_s27 = smov (!%p377_p11, %s376_s27), 2 }
 0x306   : > { %s461_s28 = sshll.u32 %s859_s27, 3 }
 0x307   : > { %s380_s30 = ssub.s32 16, %s461_s28 }
 0x308   : > { %s381_s5 = sshll.u32 %s380_s30, 4 }
 0x309   : > { %382 = vsyncadd %s786_s23, %s381_s5  ;;  %p795_p12 = scmp.ne.s32.totalorder %s461_s28, 0  ;;  %s468_s25 = sshll.u32 %s677_s19, 4 }
 0x30a   : > { %s385_s29 = scalar_lea.hbm %s850_s4, %s468_s25  ;;  %s387_s9 = sshll.u32 %s203_s20, 4  ;;  %s803_s9 = int_to_ptr.vmem [resolvable:$true] %s387_s9 }
 0x30b   : > { %s389_s10 = sshll.u32 %s385_s29, 4  ;;  %s465_s11 = sshll.u32 %s859_s27, 7  ;;  %s805_s10 = int_to_ptr.hbm [resolvable:$true] %s389_s10 }
 0x30c   : > { %s547_s12 = sshra.s32 %s803_s9, 4  ;;  %s549_s13 = sshrl.u32 %s465_s11, 4  ;;  %s548_s12 = int_to_ptr.vmem [resolvable:$true] %s547_s12 }
 0x30d   : > { %s554_s14 = scalar_lea.vmem %s548_s12, %s549_s13  ;;  %s628_s19 = smov [#allocation2]  }
 0x30e   : > { %p555_p13 = scmp.ne.s32.totalorder %s548_s12, %s554_s14  ;;  %s558_s22 = scalar_lea.vmem %s628_s19, 32 }
 0x30f   : > { %p560_p2 = scmp.lt.s32.totalorder %s558_s22, %s554_s14 }
 0x310   : > { %p556_p0 = pnand %p555_p13, %p795_p12 }
 0x312   : > { %p557_p1 = pneg %p556_p0 }
 0x314   : > { %p562_p3 = pnand %p560_p2, %p557_p1 }
 0x316   : > { %565 = shalt.err (!%p562_p3)
}
 0x317   : > { %s566_s20 = sshra.s32 %s805_s10, 4  ;;  %s577_s25 = scalar_lea.hbm %s850_s4, 24  ;;  %s567_s20 = int_to_ptr.hbm [resolvable:$true] %s566_s20 }
 0x318   : > { %s573_s28 = scalar_lea.hbm %s567_s20, %s549_s13  ;;  %p578_p8 = scmp.lt.s32.totalorder %s567_s20, %s850_s4 }
 0x319   : > { %p574_p4 = scmp.ne.s32.totalorder %s567_s20, %s573_s28  ;;  %p579_p9 = scmp.lt.s32.totalorder %s577_s25, %s573_s28 }
 0x31b   : > { %p575_p5 = pnand %p574_p4, %p795_p12  ;;  %p580_p10 = por %p579_p9, %p578_p8 }
 0x31d   : > { %p576_p7 = pneg %p575_p5 }
 0x31f   : > { %p581_p11 = pnand %p580_p10, %p576_p7 }
 0x321   : > { %584 = shalt.err (!%p581_p11)
}
 0x322   : > { %s629_s29 = smov 128   ;;  %s630_s12 = smov 8  }
 0x323   : > { %395 = dma.vmem_to_hbm [thread:$0]  (%p795_p12), %s803_s9, %s465_s11, %s805_s10, %s786_s23, %s629_s29, %s629_s29, %s630_s12  }
 0x324 PF: > { %p490_p13 = scmp.ge.s32.totalorder %s620_s18, 2  ;;  %s404_s13 = sand.u32 1, %s608_s15  }
 0x325   : > { %s405_s14 = scalar_lea.sflag [#allocation3], %s404_s13 }
 0x326   : > { %p487_p0 = pnand %p490_p13, %p698_p6 }
 0x328   : > { %p488_p1 = pneg %p487_p0 }
 0x32a   : > { %603 = dma.done.wait (%p488_p1), %s405_s14, 256  }
 0x32b   : > { %605 = vsyncadd (%p488_p1), %s405_s14, 4294967040  ;;  %p14_p2 = scmp.ge.s32.totalorder %s681_s21, 4   ;;  %s854_s15 = smov %s612_s16 }
 0x32c   : > { %s855_s16 = smov %s616_s17  ;;  %s856_s17 = smov %s692_s24 }
 0x32d   : > { %s857_s18 = smov %s681_s21  ;;  %16 = sbr.rel (!%p14_p2) target bundleno = 3 (0x3), region = 71 }
 0x332   :  { %411 = vsyncpa [#allocation3], 1 }
 0x333   :  { %413 = vsyncpa [#allocation3 + $0x1], 1 }

</bundles_post_ra>
